<compile_context>
chip_gen: v7x
topology: tpu7x:2x2x1
jax: 0.10.0
libtpu: 0.0.40
codegen_flags: <defaults>
</compile_context>

<pallas_src>
import functools

import jax
import jax.numpy as jnp
from jax.experimental import pallas as pl
from jax.experimental.pallas import tpu as pltpu


def _cam_kernel(x_ref, w1t_ref, w2t_ref, o_ref, sum_ref, max_ref, *,
                hw_total, need_mask):
    # x_ref:   (B, C, hw_tile)  current (batch-tile, spatial-tile) block
    # w1t_ref: (C, C//r)        fc[0].weight.T  (resident across the grid)
    # w2t_ref: (C//r, C)        fc[2].weight.T  (resident across the grid)
    # o_ref:   (B, C)           output block (resident across the HW axis)
    # sum_ref: (B, C) f32       running sum accumulator
    # max_ref: (B, C) f32       running max accumulator
    h = pl.program_id(1)
    nh = pl.num_programs(1)

    x = x_ref[...]                        # input dtype, no blanket upcast
    b = x.shape[0]
    hw_tile = x.shape[-1]

    def reduce_unmasked():
        s = jnp.sum(x, axis=-1, dtype=jnp.float32)          # (B, C) f32
        m = jnp.max(x, axis=-1).astype(jnp.float32)         # (B, C) f32
        return s, m

    def reduce_masked():
        # Tail tile: only the first `valid` lanes hold real data.
        valid = hw_total - h * hw_tile
        lane = jax.lax.broadcasted_iota(jnp.int32, x.shape, dimension=2)
        mask = lane < valid
        s = jnp.sum(jnp.where(mask, x, jnp.zeros_like(x)),
                    axis=-1, dtype=jnp.float32)              # (B, C) f32
        m = jnp.max(jnp.where(mask, x, jnp.full_like(x, -jnp.inf)),
                    axis=-1).astype(jnp.float32)             # (B, C) f32
        return s, m

    def finalize():
        avg = sum_ref[...] / jnp.float32(hw_total)           # (B, C) true mean
        mx = max_ref[...]                                    # (B, C)
        # One stacked operand so each fc layer is a single MXU dot (M = 2B).
        pooled = jnp.concatenate([avg, mx], axis=0)          # (2B, C) f32
        w1t = w1t_ref[...]                                   # (C, hidden)
        w2t = w2t_ref[...]                                   # (hidden, C)
        hid = jnp.maximum(
            jnp.dot(pooled.astype(w1t.dtype), w1t,
                    preferred_element_type=jnp.float32), 0.0)  # (2B, hidden)
        out2 = jnp.dot(hid.astype(w2t.dtype), w2t,
                       preferred_element_type=jnp.float32)     # (2B, C)
        out = out2[:b, :] + out2[b:, :]                        # fc(avg)+fc(max)
        o_ref[...] = jax.nn.sigmoid(out).astype(o_ref.dtype)

    if need_mask:
        # need_mask implies nh >= 2; only the final (overhanging) tile pays
        # for the mask, every earlier step takes the clean path.
        @pl.when(h == 0)
        def _init():
            s, m = reduce_unmasked()
            sum_ref[...] = s
            max_ref[...] = m

        @pl.when(jnp.logical_and(h > 0, h < nh - 1))
        def _accumulate():
            s, m = reduce_unmasked()
            sum_ref[...] = sum_ref[...] + s
            max_ref[...] = jnp.maximum(max_ref[...], m)

        @pl.when(h == nh - 1)
        def _tail_and_finalize():
            s, m = reduce_masked()
            sum_ref[...] = sum_ref[...] + s
            max_ref[...] = jnp.maximum(max_ref[...], m)
            finalize()
    else:
        s, m = reduce_unmasked()

        @pl.when(h == 0)
        def _init():
            sum_ref[...] = s
            max_ref[...] = m

        @pl.when(h > 0)
        def _accumulate():
            sum_ref[...] = sum_ref[...] + s
            max_ref[...] = jnp.maximum(max_ref[...], m)

        @pl.when(h == nh - 1)
        def _finalize():
            finalize()


def channel_attention_pallas(x_nchw, w1, w2, *,
                             tile_budget_bytes=8 * 1024 * 1024,
                             max_tile_lanes=None):
    """x_nchw: (N, C, H, W); w1: (C//r, C); w2: (C, C//r).  Returns (N, C, 1, 1).

    tile_budget_bytes bounds the per-buffer VMEM footprint of one x block
    (double-buffered by the pipeline).  The default (8 MiB) keeps the total
    footprint ~<= 24 MiB, safe on every generation including v7x's 64 MiB
    physical VMEM; vmem_limit_bytes is set explicitly from the real footprint.
    max_tile_lanes optionally forces a smaller HW tile (multiple of 128).
    """
    N, C, H, W = x_nchw.shape
    hidden = w1.shape[0]
    HW = H * W

    x_flat = x_nchw.reshape(N, C, HW)
    w1t = jnp.transpose(w1)   # (C, hidden)
    w2t = jnp.transpose(w2)   # (hidden, C)

    itemsize = jnp.dtype(x_nchw.dtype).itemsize
    w_itemsize = jnp.dtype(w1.dtype).itemsize

    # HW tile: full extent if it fits the budget, else a multiple of 128.
    # Auto-chosen tiles are floored at 512 lanes so strided per-channel DMA
    # rows stay >= ~2 KiB (f32); explicit overrides may go down to 128.
    if max_tile_lanes is not None:
        lanes_cap = max(128, (int(max_tile_lanes) // 128) * 128)
    else:
        lanes_cap = tile_budget_bytes // max(1, C * itemsize)
        lanes_cap = max(512, (lanes_cap // 128) * 128)

    if HW <= lanes_cap:
        hw_tile = HW            # full spatial extent (allowed even if not %128)
        nh = 1
        need_mask = False
    else:
        hw_tile = lanes_cap     # multiple of 128
        nh = pl.cdiv(HW, hw_tile)
        need_mask = (HW % hw_tile) != 0

    # Batch folding: when HW fits in one tile, pack several batches per block
    # (amortizes per-grid-step overhead; MLP dot M dim becomes 2*b_tile).
    b_tile = 1
    if nh == 1:
        for b in range(min(N, 64), 0, -1):
            if N % b == 0 and b * C * hw_tile * itemsize <= tile_budget_bytes:
                b_tile = b
                break

    # Explicit VMEM budget: 2x double-buffered x block + 2x weights + output
    # buffers + scratch, with headroom; floored at the 32 MiB scoped default.
    x_block_bytes = b_tile * C * hw_tile * itemsize
    w_bytes = 2 * C * hidden * w_itemsize
    needed = (2 * x_block_bytes + 2 * w_bytes
              + 2 * b_tile * C * itemsize + 2 * b_tile * C * 4)
    vmem_limit = int(max(32 * 1024 * 1024, needed + 8 * 1024 * 1024))

    kernel = functools.partial(_cam_kernel, hw_total=HW, need_mask=need_mask)

    out = pl.pallas_call(
        kernel,
        out_shape=jax.ShapeDtypeStruct((N, C), x_nchw.dtype),
        grid_spec=pltpu.PrefetchScalarGridSpec(
            num_scalar_prefetch=0,
            grid=(N // b_tile, nh),           # batch parallel, HW reduction last
            in_specs=[
                pl.BlockSpec((b_tile, C, hw_tile), lambda n, h: (n, 0, h)),
                pl.BlockSpec((C, hidden), lambda n, h: (0, 0)),
                pl.BlockSpec((hidden, C), lambda n, h: (0, 0)),
            ],
            out_specs=pl.BlockSpec((b_tile, C), lambda n, h: (n, 0)),
            scratch_shapes=[pltpu.VMEM((b_tile, C), jnp.float32),   # running sum
                            pltpu.VMEM((b_tile, C), jnp.float32)],  # running max
        ),
        compiler_params=pltpu.CompilerParams(
            dimension_semantics=("parallel", "arbitrary"),
            vmem_limit_bytes=vmem_limit),
    )(x_flat, w1t, w2t)

    return out.reshape(N, C, 1, 1)


def channel_attention_ref(x_nchw, w1, w2):
    """Pure-JAX reference mirroring the PyTorch forward (f32 math)."""
    xf = x_nchw.astype(jnp.float32)
    avg = jnp.mean(xf, axis=(2, 3))               # (N, C)
    mx = jnp.max(xf, axis=(2, 3))                 # (N, C)
    w1f = w1.astype(jnp.float32)
    w2f = w2.astype(jnp.float32)

    def fc(v):
        h = jnp.maximum(v @ w1f.T, 0.0)           # (N, C//r)
        return h @ w2f.T                          # (N, C)

    out = jax.nn.sigmoid(fc(avg) + fc(mx))
    return out.reshape(*out.shape, 1, 1)


if __name__ == "__main__":
    key = jax.random.PRNGKey(0)
    k_x, k_w1, k_w2, k_x2 = jax.random.split(key, 4)

    N, C, H, W = 2, 8, 16, 16
    reduction = 4
    hidden = C // reduction

    x = jax.random.normal(k_x, (N, C, H, W), dtype=jnp.float32)
    # Synthetic weights (shapes match nn.Conv2d(..., 1, bias=False)):
    #   fc[0].weight: (C//r, C, 1, 1) -> (C//r, C);  fc[2].weight: (C, C//r, 1, 1) -> (C, C//r)
    w1 = jax.random.normal(k_w1, (hidden, C), dtype=jnp.float32) * (1.0 / (C ** 0.5))
    w2 = jax.random.normal(k_w2, (C, hidden), dtype=jnp.float32) * (1.0 / (hidden ** 0.5))

    y_ref = channel_attention_ref(x, w1, w2)

    # 1) Default path: single spatial tile, batch folded into the block.
    y = channel_attention_pallas(x, w1, w2)
    jax.block_until_ready(y)
    assert y.shape == (N, C, 1, 1)
    assert jnp.allclose(y, y_ref, atol=1e-5, rtol=1e-5), "mismatch (single tile, batched)"

    # 2) Forced spatial tiling (HW=256 -> 2 tiles of 128): exercises the
    #    running sum/max accumulation across the reduction grid axis.
    y2 = channel_attention_pallas(x, w1, w2, max_tile_lanes=128)
    jax.block_until_ready(y2)
    assert jnp.allclose(y2, y_ref, atol=1e-5, rtol=1e-5), "mismatch (tiled HW)"

    # 3) Non-divisible spatial extent (18*18 = 324, tile 128): exercises the
    #    gated masked tail tile (mask runs only on the last HW step).
    x3 = jax.random.normal(k_x2, (N, C, 18, 18), dtype=jnp.float32)
    y3_ref = channel_attention_ref(x3, w1, w2)
    y3 = channel_attention_pallas(x3, w1, w2, max_tile_lanes=128)
    jax.block_until_ready(y3)
    assert jnp.allclose(y3, y3_ref, atol=1e-5, rtol=1e-5), "mismatch (masked tail)"

    # 4) Single tile with HW not a multiple of 128 (HW=324, nh=1): regression
    #    test for Mosaic masking padded lanes inside the logical-extent reduce.
    y4 = channel_attention_pallas(x3, w1, w2)
    jax.block_until_ready(y4)
    assert jnp.allclose(y4, y3_ref, atol=1e-5, rtol=1e-5), "mismatch (single odd tile)"

    # 5) bf16 input path: max in bf16, sum accumulated in f32.
    xb = x.astype(jnp.bfloat16)
    yb_ref = channel_attention_ref(xb, w1, w2)
    yb = channel_attention_pallas(xb, w1, w2, max_tile_lanes=128)
    jax.block_until_ready(yb)
    assert jnp.allclose(yb.astype(jnp.float32), yb_ref, atol=2e-2, rtol=2e-2), \
        "mismatch (bf16 input)"

    print("KERNEL_OK")
</pallas_src>

<mosaic_0001>
module attributes {stable_mosaic.version = 11 : i64} {
  func.func @_cam_kernel(%arg0: i32, %arg1: i32, %arg2: memref<2x8x256xf32, #tpu.memory_space<vmem>>, %arg3: memref<8x2xf32, #tpu.memory_space<vmem>>, %arg4: memref<2x8xf32, #tpu.memory_space<vmem>>, %arg5: memref<2x8xf32, #tpu.memory_space<vmem>>, %arg6: memref<2x8xf32, #tpu.memory_space<vmem>>, %arg7: memref<2x8xf32, #tpu.memory_space<vmem>>) attributes {dimension_semantics = [#tpu.dimension_semantics<parallel>, #tpu.dimension_semantics<arbitrary>], iteration_bounds = array<i64: 1, 1>, scalar_prefetch = 0 : i64, scratch_operands = 2 : i64, tpu.core_type = #tpu.core_type<tc>, window_params = [{transform_indices = @transform_0, window_bounds = array<i64: 2, 8, 256>}, {pipeline_mode = #tpu.pipeline_mode<synchronous>, transform_indices = @transform_1, window_bounds = array<i64: 8, 2>}, {pipeline_mode = #tpu.pipeline_mode<synchronous>, transform_indices = @transform_2, window_bounds = array<i64: 2, 8>}, {transform_indices = @transform_3, window_bounds = array<i64: 2, 8>}]} {
    %c0 = arith.constant 0 : index
    %c0_0 = arith.constant 0 : index
    %c0_1 = arith.constant 0 : index
    %0 = vector.load %arg2[%c0, %c0_0, %c0_1] : memref<2x8x256xf32, #tpu.memory_space<vmem>>, vector<2x8x256xf32>
    %cst = arith.constant dense<0.000000e+00> : vector<2x8xf32>
    %1 = vector.multi_reduction <add>, %0, %cst [2] : vector<2x8x256xf32> to vector<2x8xf32>
    %cst_2 = arith.constant dense<0xFF800000> : vector<2x8xf32>
    %2 = vector.multi_reduction <maximumf>, %0, %cst_2 [2] : vector<2x8x256xf32> to vector<2x8xf32>
    %c0_i32 = arith.constant 0 : i32
    %3 = arith.cmpi eq, %arg1, %c0_i32 : i32
    %4 = arith.extui %3 : i1 to i32
    %c0_i32_3 = arith.constant 0 : i32
    %5 = arith.cmpi ne, %4, %c0_i32_3 : i32
    scf.if %5 {
      %c0_8 = arith.constant 0 : index
      %c0_9 = arith.constant 0 : index
      %12 = vector.load %arg6[%c0_8, %c0_9] : memref<2x8xf32, #tpu.memory_space<vmem>>, vector<2x8xf32>
      tpu.vector_store %arg6[%c0_8, %c0_9], %1 {strides = array<i32>} : memref<2x8xf32, #tpu.memory_space<vmem>>, vector<2x8xf32>,
      %c0_10 = arith.constant 0 : index
      %c0_11 = arith.constant 0 : index
      %13 = vector.load %arg7[%c0_10, %c0_11] : memref<2x8xf32, #tpu.memory_space<vmem>>, vector<2x8xf32>
      tpu.vector_store %arg7[%c0_10, %c0_11], %2 {strides = array<i32>} : memref<2x8xf32, #tpu.memory_space<vmem>>, vector<2x8xf32>,
    } else {
    }
    %c0_i32_4 = arith.constant 0 : i32
    %6 = arith.cmpi sgt, %arg1, %c0_i32_4 : i32
    %7 = arith.extui %6 : i1 to i32
    %c0_i32_5 = arith.constant 0 : i32
    %8 = arith.cmpi ne, %7, %c0_i32_5 : i32
    scf.if %8 {
      %c0_8 = arith.constant 0 : index
      %c0_9 = arith.constant 0 : index
      %12 = vector.load %arg6[%c0_8, %c0_9] : memref<2x8xf32, #tpu.memory_space<vmem>>, vector<2x8xf32>
      %13 = arith.addf %12, %1 : vector<2x8xf32>
      %c0_10 = arith.constant 0 : index
      %c0_11 = arith.constant 0 : index
      %14 = vector.load %arg6[%c0_10, %c0_11] : memref<2x8xf32, #tpu.memory_space<vmem>>, vector<2x8xf32>
      tpu.vector_store %arg6[%c0_10, %c0_11], %13 {strides = array<i32>} : memref<2x8xf32, #tpu.memory_space<vmem>>, vector<2x8xf32>,
      %c0_12 = arith.constant 0 : index
      %c0_13 = arith.constant 0 : index
      %15 = vector.load %arg7[%c0_12, %c0_13] : memref<2x8xf32, #tpu.memory_space<vmem>>, vector<2x8xf32>
      %16 = arith.maximumf %15, %2 : vector<2x8xf32>
      %c0_14 = arith.constant 0 : index
      %c0_15 = arith.constant 0 : index
      %17 = vector.load %arg7[%c0_14, %c0_15] : memref<2x8xf32, #tpu.memory_space<vmem>>, vector<2x8xf32>
      tpu.vector_store %arg7[%c0_14, %c0_15], %16 {strides = array<i32>} : memref<2x8xf32, #tpu.memory_space<vmem>>, vector<2x8xf32>,
    } else {
    }
    %c0_i32_6 = arith.constant 0 : i32
    %9 = arith.cmpi eq, %arg1, %c0_i32_6 : i32
    %10 = arith.extui %9 : i1 to i32
    %c0_i32_7 = arith.constant 0 : i32
    %11 = arith.cmpi ne, %10, %c0_i32_7 : i32
    scf.if %11 {
      %c0_8 = arith.constant 0 : index
      %c0_9 = arith.constant 0 : index
      %12 = vector.load %arg6[%c0_8, %c0_9] : memref<2x8xf32, #tpu.memory_space<vmem>>, vector<2x8xf32>
      %cst_10 = arith.constant 2.560000e+02 : f32
      %13 = vector.broadcast %cst_10 : f32 to vector<2x8xf32>
      %14 = arith.divf %12, %13 : vector<2x8xf32>
      %c0_11 = arith.constant 0 : index
      %c0_12 = arith.constant 0 : index
      %15 = vector.load %arg7[%c0_11, %c0_12] : memref<2x8xf32, #tpu.memory_space<vmem>>, vector<2x8xf32>
      %16 = tpu.concatenate %14, %15 in 0 : vector<2x8xf32>, vector<2x8xf32> -> vector<4x8xf32>
      %c0_13 = arith.constant 0 : index
      %c0_14 = arith.constant 0 : index
      %17 = vector.load %arg3[%c0_13, %c0_14] : memref<8x2xf32, #tpu.memory_space<vmem>>, vector<8x2xf32>
      %c0_15 = arith.constant 0 : index
      %c0_16 = arith.constant 0 : index
      %18 = vector.load %arg4[%c0_15, %c0_16] : memref<2x8xf32, #tpu.memory_space<vmem>>, vector<2x8xf32>
      %cst_17 = arith.constant dense<0.000000e+00> : vector<4x2xf32>
      %19 = tpu.matmul %16, %17, %cst_17 {dimension_numbers = #tpu.dot_dimension_numbers<[1], [0], [0], [1], [0, 0, 1, 1], [], []>} : vector<4x8xf32>, vector<8x2xf32>, vector<4x2xf32> -> vector<4x2xf32>
      %cst_18 = arith.constant 0.000000e+00 : f32
      %20 = vector.broadcast %cst_18 : f32 to vector<4x2xf32>
      %21 = arith.maximumf %19, %20 : vector<4x2xf32>
      %cst_19 = arith.constant dense<0.000000e+00> : vector<4x8xf32>
      %22 = tpu.matmul %21, %18, %cst_19 {dimension_numbers = #tpu.dot_dimension_numbers<[1], [0], [0], [1], [0, 0, 1, 1], [], []>} : vector<4x2xf32>, vector<2x8xf32>, vector<4x8xf32> -> vector<4x8xf32>
      %23 = vector.extract_strided_slice %22 {offsets = [0, 0], sizes = [2, 8], strides = [1, 1]} : vector<4x8xf32> to vector<2x8xf32>
      %24 = vector.extract_strided_slice %22 {offsets = [2, 0], sizes = [2, 8], strides = [1, 1]} : vector<4x8xf32> to vector<2x8xf32>
      %25 = arith.addf %23, %24 : vector<2x8xf32>
      %26 = arith.negf %25 : vector<2x8xf32>
      %27 = math.exp %26 : vector<2x8xf32>
      %cst_20 = arith.constant 1.000000e+00 : f32
      %28 = vector.broadcast %cst_20 : f32 to vector<2x8xf32>
      %29 = arith.addf %28, %27 : vector<2x8xf32>
      %30 = arith.divf %28, %29 : vector<2x8xf32>
      %c0_21 = arith.constant 0 : index
      %c0_22 = arith.constant 0 : index
      %31 = vector.load %arg5[%c0_21, %c0_22] : memref<2x8xf32, #tpu.memory_space<vmem>>, vector<2x8xf32>
      tpu.vector_store %arg5[%c0_21, %c0_22], %30 {strides = array<i32>} : memref<2x8xf32, #tpu.memory_space<vmem>>, vector<2x8xf32>,
    } else {
    }
    return
  }
  func.func @transform_0(%arg0: i32, %arg1: i32) -> (i32, i32, i32) {
    %c0_i32 = arith.constant 0 : i32
    %c0_i32_0 = arith.constant 0 : i32
    return %arg0, %c0_i32, %arg1 : i32, i32, i32
  }
  func.func @transform_1(%arg0: i32, %arg1: i32) -> (i32, i32) {
    %c0_i32 = arith.constant 0 : i32
    %c0_i32_0 = arith.constant 0 : i32
    %c0_i32_1 = arith.constant 0 : i32
    return %c0_i32, %c0_i32_0 : i32, i32
  }
  func.func @transform_2(%arg0: i32, %arg1: i32) -> (i32, i32) {
    %c0_i32 = arith.constant 0 : i32
    %c0_i32_0 = arith.constant 0 : i32
    %c0_i32_1 = arith.constant 0 : i32
    return %c0_i32, %c0_i32_0 : i32, i32
  }
  func.func @transform_3(%arg0: i32, %arg1: i32) -> (i32, i32) {
    %c0_i32 = arith.constant 0 : i32
    %c0_i32_0 = arith.constant 0 : i32
    return %arg0, %c0_i32 : i32, i32
  }
}

</mosaic_0001>

<bundles_post_ra>
// kernel: tpu_custom_call.1
= control target key start
LH: loop header
LB: loop body
LE: loop exit
PB: predicated region body
PF: predicated region fallthrough
CT: control target
= control target key end

     0   :  { %8 = vsyncpa [#allocation5], 0  ;;  %s445_s0 = inlined_call_operand.hbm [shape: f32[2,8,256], index: 0, kind: input, shape index: {}]   ;;  %s446_s1 = inlined_call_operand.vmem [shape: f32[8,2], index: 1, kind: input, shape index: {}]   ;;  %s447_s2 = inlined_call_operand.vmem [shape: f32[2,8], index: 2, kind: input, shape index: {}]   ;;  %s448_s3 = inlined_call_operand.hbm [shape: f32[2,8], index: 3, kind: output, shape index: {}]  }
   0x1   :  { %9 = vsyncpa [#allocation6], 0  ;;  %s386_s12 = smov [#allocation4]   ;;  %s338_s16 = scalar_lea.hbm %s445_s0, 512 }
   0x2   :  { %s15_s13 = sshll.u32 %s386_s12, 4  ;;  %p339_p0 = scmp.ne.s32.totalorder %s445_s0, %s338_s16  ;;  %s16_s13 = int_to_ptr.vmem [resolvable:$true] %s15_s13 }
   0x3   :  { %p342_p1 = scmp.lt.u32.totalorder %s338_s16, %s445_s0 }
   0x5   :  { %p344_p2 = pnand %p342_p1, %p339_p0 }
   0x7   :  { %347 = shalt.err (!%p344_p2)
}
   0x8   :  { %s348_s21 = scalar_lea.vmem %s16_s13, 512  ;;  %p353_p4 = scmp.lt.s32.totalorder %s16_s13, %s16_s13 }
   0x9   :  { %p349_p3 = scmp.ne.s32.totalorder %s16_s13, %s348_s21  ;;  %p354_p5 = scmp.lt.s32.totalorder %s348_s21, %s348_s21 }
   0xb   :  { %p355_p6 = por %p354_p5, %p353_p4 }
   0xd   :  { %p356_p7 = pnand %p355_p6, %p349_p3 }
   0xf   :  { %359 = shalt.err (!%p356_p7)
}
  0x10   :  { %s387_s22 = smov 256   ;;  %s388_s23 = smov 16  }
  0x11   :  { %21 = dma.hbm_to_vmem [thread:$0]  %s445_s0, 512, %s16_s13, [#allocation5], %s387_s22, %s387_s22, %s388_s23  }
  0x12   :  { %382 = dma.done.wait [#allocation5], 512  }
  0x13   :  { %383 = vsyncadd [#allocation5], 4294966784  ;;  %v29_v0 = vld [vmem:[#allocation4] sm:$0xff]  ;;  %v30_v1 = vld [vmem:[#allocation4 + $0x8] sm:$0xff]  ;;  %v389_v9 = vmov 0.0   ;;  %vm390_vm0 = vmmov 0   ;;  %v51_v10 = vlaneseq }
  0x14   :  { %v31_v2 = vld [vmem:[#allocation4 + $0x10] sm:$0xff]  ;;  %v39_v3 = vmax.f32 %v29_v0, %v30_v1  ;;  %v33_v4 = vadd.f32 %v30_v1, %v29_v0  ;;  %v32_v5 = vld [vmem:[#allocation4 + $0x18] sm:$0xff]  ;;  %318 = vmatprep.subr.mxu0 %v389_v9  ;;  %320 = vmatprep.mubr.msk.f32.mxu0 %vm390_vm0, %v389_v9  ;;  %vm61_vm1 = vcmask 1041409   ;;  %vm64_vm2 = vcmask 58368   ;;  %s391_s28 = smov [#allocation7]  }
  0x15   :  { %v42_v6 = vmax.f32 %v31_v2, %v32_v5  ;;  %v36_v7 = vadd.f32 %v32_v5, %v31_v2  ;;  %v129_v8 = vld [vmem:[%s446_s1] sm:$0xff]  ;;  %323 = vmatprep.subr.mxu1 %v389_v9  ;;  %325 = vmatprep.mubr.msk.f32.mxu1 %vm390_vm0, %v389_v9  ;;  %v52_v11 = vand.u32 127, %v51_v10  ;;  %v54_v12 = vshrl.u32 %v51_v10, 7  ;;  %s301_s29 = sshll.u32 %s391_s28, 4  ;;  %s302_s29 = int_to_ptr.vmem [resolvable:$true] %s301_s29 }
  0x16   :  { %40 = vmax.xlane.f32.xlu1 %v39_v3  ;;  %34 = vadd.xlane.f32.xlu0 %v33_v4  ;;  %vm127_vm3 = vcmask 1041408   ;;  %vm131_vm4 = vcmask 64512   ;;  %v130_v29 = vld [vmem:[%s447_s2] sm:$0x3]  ;;  %vm206_vm5 = vcmask 15360   ;;  %s360_s2 = scalar_lea.vmem %s302_s29, 32  ;;  %p365_p9 = scmp.lt.s32.totalorder %s302_s29, %s302_s29 }
  0x17   :  { %319 = vmatpush3.msra.mxu0 %v129_v8  ;;  %v55_v15 = vsub.s32 %v52_v11, %v54_v12  ;;  %324 = vmatpush3.msk.msra.mxu1 %vm127_vm3, %v130_v29  ;;  %p361_p8 = scmp.ne.s32.totalorder %s302_s29, %s360_s2  ;;  %p366_p10 = scmp.lt.s32.totalorder %s360_s2, %s360_s2 }
  0x19   :  { %p367_p11 = por %p366_p10, %p365_p9 }
  0x1a   :  { %43 = vmax.xlane.f32.xlu1 %v42_v6  ;;  %37 = vadd.xlane.f32.xlu0 %v36_v7 }
  0x1b   :  { %p368_p12 = pnand %p367_p11, %p361_p8 }
  0xa3   :  { %v41_v13 = vpop.xlane.xlu1 %40  ;;  %v35_v14 = vpop.xlane.xlu0 %34 }
  0xa4   :  { %v71_v18 = vrot.slane %v41_v13, %v55_v15  ;;  %v56_v19 = vrot.slane %v35_v14, %v55_v15 }
  0xa7   :  { %v44_v16 = vpop.xlane.xlu1 %43  ;;  %v38_v17 = vpop.xlane.xlu0 %37 }
  0xa8   :  { %v75_v20 = vrot.slane %v44_v16, %v55_v15  ;;  %v60_v21 = vrot.slane %v38_v17, %v55_v15 }
  0xaa   :  { %v76_v22 = vsel %vm61_vm1, %v75_v20, %v71_v18  ;;  %v62_v23 = vsel %vm61_vm1, %v60_v21, %v56_v19 }
  0xab   :  { %78 = vst.msk [vmem:[#allocation3] sm:$0x3] %vm64_vm2, %v76_v22  ;;  %65 = vst.msk [vmem:[#allocation2] sm:$0x3] %vm64_vm2, %v62_v23 }
  0xb2   :  { %v120_v24 = vld [vmem:[#allocation2] sm:$0x3]  ;;  %v123_v25 = vld [vmem:[#allocation3] sm:$0x3] }
  0xb3   :  { %v122_v26 = vmul.f32 0.00390625, %v120_v24  ;;  %v125_v27 = vrot.slane %v123_v25, 6 }
  0xb5   :  { %v128_v28 = vsel %vm127_vm3, %v122_v26, %v125_v27 }
  0xb6   :  { %321 = vmatmul.mubr.msk.f32.vlgmr.msra.gmra.mrb[0].mxu0 %vm131_vm4, %v128_v28 }
 0x189   :  { %v201_v30 = vpop.f32.mrb[0].mxu0 }
 0x18a   :  { %v205_v31 = vmax.f32 %v201_v30, 0.0  ;;  %v322_v32 = vpop.f32.mrb[1].mxu0 }
 0x18c   :  { %326 = vmatmul.mubr.msk.f32.vlgmr.msra.gmra.mrb[0].mxu1 %vm206_vm5, %v205_v31 }
 0x25f   :  { %v279_v33 = vpop.f32.mrb[0].mxu1 }
 0x260   :  { %v284_v34 = vrot.slane %v279_v33, 2  ;;  %v327_v35 = vpop.f32.mrb[1].mxu1 }
 0x262   :  { %v286_v36 = vadd.f32 %v284_v34, %v279_v33 }
 0x264   :  { %v313_v37 = vmul.f32 -1.442695, %v286_v36 }
 0x266   :  { %334 = vpow2.f32 %v313_v37 }
 0x270   :  { %v335_v38 = vpop.eup %334 }
 0x271   :  { %v290_v39 = vadd.f32 1.0, %v335_v38 }
 0x273   :  { %336 = vrcp.f32 %v290_v39 }
 0x27d   :  { %v337_v40 = vpop.eup %336 }
 0x27e   :  { %294 = vst.msk [vmem:[#allocation7] sm:$0x3] %vm64_vm2, %v337_v40 }
 0x27f   :  { %371 = shalt.err (!%p368_p12)
}
 0x280   :  { %s372_s5 = scalar_lea.hbm %s448_s3, 32 }
 0x281   :  { %p373_p13 = scmp.ne.s32.totalorder %s448_s3, %s372_s5  ;;  %p376_p0 = scmp.lt.u32.totalorder %s372_s5, %s448_s3 }
 0x283   :  { %p378_p1 = pnand %p376_p0, %p373_p13 }
 0x285   :  { %381 = shalt.err (!%p378_p1)
}
 0x286   :  { %304 = dma.vmem_to_hbm [thread:$0]  %s302_s29, 32, %s448_s3, [#allocation6]  }
 0x287   :  { %384 = dma.done.wait [#allocation6], 32  }
 0x288   :  { %385 = vsyncadd [#allocation6], 4294967264 }
 0x289   :  { %308 = vsyncpa [#allocation5], 1 }
 0x28a   :  { %309 = vsyncpa [#allocation6], 1 }

</bundles_post_ra>
